<compile_context>
chip_gen: v7x
topology: tpu7x:2x2x1
jax: 0.10.0
libtpu: 0.0.40
codegen_flags: <defaults>
</compile_context>

<pallas_src>
import functools

import jax
import jax.numpy as jnp
from jax.experimental import pallas as pl
from jax.experimental.pallas import tpu as pltpu

HIDDEN = 32      # module-level `batch_size` constant in the PyTorch file = 32,
                 # used as the GraphConv output channel count (fc expects 32).
IN_CH = 35       # conv1 input channels
OUT_CH = 2       # fc output
_HI = jax.lax.Precision.HIGHEST


# ---------------------------------------------------------------------------
# Adjacency construction (wrapper side, plain XLA — vectorized, no scatter)
# ---------------------------------------------------------------------------
def _build_adj_blocks(edge_index, B, N):
    """Per-graph normalized adjacency blocks, (B, N, N) f32.

    Matches GraphConvLayer's block-diagonal construction: off-diagonal blocks
    are zero, so degrees only involve a node's own block.  Set semantics
    (duplicate edges clamp to 1), not symmetrized, then +I and D^-1/2 A D^-1/2.
    """
    src = edge_index[0].T.astype(jnp.int32)                    # (B, E)
    dst = edge_index[1].T.astype(jnp.int32)                    # (B, E)
    oh_src = jax.nn.one_hot(src, N, dtype=jnp.float32)         # (B, E, N)
    oh_dst = jax.nn.one_hot(dst, N, dtype=jnp.float32)         # (B, E, N)
    counts = jnp.einsum('ben,bem->bnm', oh_src, oh_dst)        # edge multiplicity
    adj = jnp.minimum(counts, 1.0)                             # set semantics
    adj = adj + jnp.eye(N, dtype=jnp.float32)[None]
    deg = adj.sum(axis=2)                                      # (B, N), >= 1
    d_inv_sqrt = jnp.where(deg > 0.0, jax.lax.rsqrt(deg), 0.0)
    return d_inv_sqrt[:, :, None] * adj * d_inv_sqrt[:, None, :]


def _block_diag_tiles(adj, T, Bt, N):
    """(B, N, N) per-graph blocks -> (T, Bt*N, Bt*N) block-diagonal tiles."""
    adj_t = adj.reshape(T, Bt, N, N)
    eye_bt = jnp.eye(Bt, dtype=adj.dtype)
    bd = adj_t[:, :, :, None, :] * eye_bt[None, :, None, :, None]  # (T,Bt,N,Bt,N)
    return bd.reshape(T, Bt * N, Bt * N)


def _choose_bt(B, N, mxu_rows):
    """Largest divisor of B with Bt*N <= mxu_rows; prefer >= 2 grid steps
    (v7x dual-TC / pipelining) as long as the tile keeps >= 128 rows."""
    divs = [d for d in range(1, B + 1) if B % d == 0 and d * N <= mxu_rows]
    bt = divs[-1]
    if B // bt == 1:
        smaller = [d for d in divs if B // d >= 2 and d * N >= 128]
        if smaller:
            bt = smaller[-1]
    return bt


# ---------------------------------------------------------------------------
# Pallas kernel: one block-diagonal tile of Bt graphs per grid step
# ---------------------------------------------------------------------------
def _mc_mgcnn_kernel(adj_ref, xw_ref, b1_ref, w2_ref, b2_ref, pool_ref, out_ref):
    adj = adj_ref[...]                          # (Bt*N, Bt*N) compute_dtype
    # conv1 (x @ W1^T hoisted to XLA): relu(adj @ xw + b1)
    h = jnp.dot(adj, xw_ref[...], preferred_element_type=jnp.float32) + b1_ref[...]
    h = jnp.maximum(h, 0.0)                     # (Bt*N, 32) f32
    # conv2: relu((adj @ h) @ W2^T + b2)
    h = jnp.dot(adj, h.astype(adj.dtype), preferred_element_type=jnp.float32)
    h = jnp.dot(h.astype(adj.dtype), w2_ref[...],
                preferred_element_type=jnp.float32) + b2_ref[...]
    h = jnp.maximum(h, 0.0)                     # (Bt*N, 32) f32
    # Per-graph mean over nodes as one tiny exact-f32 matmul with the fixed
    # (Bt, Bt*N) pooling matrix -> (Bt, 32) written in a single store.
    out_ref[...] = jnp.dot(pool_ref[...], h, preferred_element_type=jnp.float32)


# ---------------------------------------------------------------------------
# Wrapper
# ---------------------------------------------------------------------------
def mc_mgcnn_forward(x, edge_index, params, *,
                     compute_dtype=jnp.bfloat16, mxu_rows=256):
    """x: (B, N, 35) f32, edge_index: (2, E, B) int32 -> (B, 2) f32.

    `mxu_rows`: target tile rows (Bt*N). 256 fills the v6e/v7x MXU; use 128
    on v5e.  `compute_dtype`: dtype of the adjacency-path matmul operands
    (accumulation is always f32).
    """
    B, N, C = x.shape
    assert C == IN_CH
    w1, b1, w2, b2, wf, bf = params

    Bt = _choose_bt(B, N, mxu_rows)
    T = B // Bt
    M = Bt * N

    # Normalized per-graph adjacency -> block-diagonal MXU-width tiles.
    adj = _build_adj_blocks(edge_index, B, N)                   # (B, N, N) f32
    adj_bd = _block_diag_tiles(adj, T, Bt, N).astype(compute_dtype)  # (T, M, M)

    # conv1 linear hoisted: one big XLA matmul; kernel only sees 32-wide lanes.
    xw = jnp.dot(x.reshape(B * N, C), w1.T, precision=_HI)      # (B*N, 32) f32
    xw = xw.reshape(T, M, HIDDEN).astype(compute_dtype)

    # Fixed per-graph mean-pooling matrix (exact, f32).
    pool = jnp.repeat(jnp.eye(Bt, dtype=jnp.float32), N, axis=1) / N   # (Bt, M)

    itemsize = jnp.dtype(compute_dtype).itemsize
    flops = 2 * T * (2 * M * M * HIDDEN + M * HIDDEN * HIDDEN + Bt * M * HIDDEN)
    bytes_accessed = (adj_bd.size * itemsize + xw.size * itemsize
                      + (HIDDEN * HIDDEN) * itemsize + 2 * HIDDEN * 4
                      + Bt * M * 4 + B * HIDDEN * 4)

    pooled = pl.pallas_call(
        _mc_mgcnn_kernel,
        out_shape=jax.ShapeDtypeStruct((T, Bt, HIDDEN), jnp.float32),
        grid_spec=pltpu.PrefetchScalarGridSpec(
            num_scalar_prefetch=0,
            grid=(T,),
            in_specs=[
                pl.BlockSpec((pl.Squeezed(), M, M), lambda t: (t, 0, 0)),       # adj tile
                pl.BlockSpec((pl.Squeezed(), M, HIDDEN), lambda t: (t, 0, 0)),  # xw tile
                pl.BlockSpec((1, HIDDEN), lambda t: (0, 0)),                    # b1 (resident)
                pl.BlockSpec((HIDDEN, HIDDEN), lambda t: (0, 0)),               # W2^T (resident)
                pl.BlockSpec((1, HIDDEN), lambda t: (0, 0)),                    # b2 (resident)
                pl.BlockSpec((Bt, M), lambda t: (0, 0)),                        # pooling matrix
            ],
            out_specs=pl.BlockSpec((pl.Squeezed(), Bt, HIDDEN), lambda t: (t, 0, 0)),
        ),
        compiler_params=pltpu.CompilerParams(
            dimension_semantics=("parallel",)),                  # v7x dual-TC sharding
        cost_estimate=pl.CostEstimate(flops=int(flops), transcendentals=0,
                                      bytes_accessed=int(bytes_accessed)),
    )(adj_bd, xw, b1[None, :], w2.T.astype(compute_dtype), b2[None, :], pool)

    # Final fc kept in plain XLA: a 2-lane output matmul/store is the worst
    # possible MXU / vst shape, so it lives outside the kernel.
    pooled = pooled.reshape(B, HIDDEN)
    return jnp.dot(pooled, wf.T, precision=_HI) + bf


# ---------------------------------------------------------------------------
# Pure-JAX reference mirroring the PyTorch forward (dense block-diag, scatter)
# ---------------------------------------------------------------------------
def mc_mgcnn_reference(x, edge_index, params):
    B, N, C = x.shape
    src = edge_index[0]                                         # (E, B)
    dst = edge_index[1]
    offsets = (jnp.arange(B, dtype=jnp.int32) * N)[None, :]
    src_g = (src + offsets).reshape(-1)
    dst_g = (dst + offsets).reshape(-1)
    BN = B * N
    adj = jnp.zeros((BN, BN), jnp.float32).at[src_g, dst_g].set(1.0)
    adj = adj + jnp.eye(BN, dtype=jnp.float32)
    deg = adj.sum(axis=1)
    d_inv_sqrt = jnp.where(deg > 0.0, deg ** -0.5, 0.0)
    adj_norm = d_inv_sqrt[:, None] * adj * d_inv_sqrt[None, :]

    w1, b1, w2, b2, wf, bf = params
    dot = functools.partial(jnp.dot, precision=_HI)
    h = dot(adj_norm, x.reshape(BN, C))
    h = jnp.maximum(dot(h, w1.T) + b1, 0.0)
    h = dot(adj_norm, h)
    h = jnp.maximum(dot(h, w2.T) + b2, 0.0)
    pooled = h.reshape(B, N, HIDDEN).mean(axis=1)
    return dot(pooled, wf.T) + bf


def init_params(key):
    k1, k2, k3, k4, k5, k6 = jax.random.split(key, 6)
    # nn.Linear weights are (out, in); biases (out,)
    w1 = jax.random.normal(k1, (HIDDEN, IN_CH), jnp.float32) * 0.1
    b1 = jax.random.normal(k2, (HIDDEN,), jnp.float32) * 0.1
    w2 = jax.random.normal(k3, (HIDDEN, HIDDEN), jnp.float32) * 0.1
    b2 = jax.random.normal(k4, (HIDDEN,), jnp.float32) * 0.1
    wf = jax.random.normal(k5, (OUT_CH, HIDDEN), jnp.float32) * 0.1
    bf = jax.random.normal(k6, (OUT_CH,), jnp.float32) * 0.1
    return (w1, b1, w2, b2, wf, bf)


if __name__ == "__main__":
    key = jax.random.PRNGKey(0)
    kx, ke, kp = jax.random.split(key, 3)

    B, N, E = 4, 8, 6
    x = jax.random.normal(kx, (B, N, IN_CH), jnp.float32)
    # edge indices must satisfy both the outer (< B) and inner (< N) asserts
    edge_index = jax.random.randint(ke, (2, E, B), 0, min(B, N), dtype=jnp.int32)
    params = init_params(kp)

    ref = mc_mgcnn_reference(x, edge_index, params)

    # Tight check: f32 kernel path vs. pure-JAX reference.
    out_f32 = jax.block_until_ready(
        mc_mgcnn_forward(x, edge_index, params, compute_dtype=jnp.float32))
    assert out_f32.shape == (B, OUT_CH)
    assert jnp.allclose(out_f32, ref, atol=5e-3, rtol=5e-3), (out_f32, ref)

    # bf16 adjacency path validated against the f32 kernel run (per review),
    # not by loosening the reference check.
    out_bf16 = jax.block_until_ready(
        mc_mgcnn_forward(x, edge_index, params, compute_dtype=jnp.bfloat16))
    assert jnp.allclose(out_bf16, out_f32, atol=2e-2, rtol=2e-2), (out_bf16, out_f32)

    print("KERNEL_OK")
</pallas_src>

<mosaic_0001>
module attributes {stable_mosaic.version = 11 : i64} {
  func.func @_mc_mgcnn_kernel(%arg0: i32, %arg1: memref<1x32x32xf32, #tpu.memory_space<vmem>>, %arg2: memref<1x32x32xf32, #tpu.memory_space<vmem>>, %arg3: memref<1x32xf32, #tpu.memory_space<vmem>>, %arg4: memref<32x32xf32, #tpu.memory_space<vmem>>, %arg5: memref<1x32xf32, #tpu.memory_space<vmem>>, %arg6: memref<4x32xf32, #tpu.memory_space<vmem>>, %arg7: memref<1x4x32xf32, #tpu.memory_space<vmem>>) attributes {dimension_semantics = [#tpu.dimension_semantics<parallel>], iteration_bounds = array<i64: 1>, scalar_prefetch = 0 : i64, scratch_operands = 0 : i64, tpu.core_type = #tpu.core_type<tc>, window_params = [{transform_indices = @transform_0, window_bounds = array<i64: 1, 32, 32>}, {transform_indices = @transform_1, window_bounds = array<i64: 1, 32, 32>}, {pipeline_mode = #tpu.pipeline_mode<synchronous>, transform_indices = @transform_2, window_bounds = array<i64: 1, 32>}, {pipeline_mode = #tpu.pipeline_mode<synchronous>, transform_indices = @transform_3, window_bounds = array<i64: 32, 32>}, {pipeline_mode = #tpu.pipeline_mode<synchronous>, transform_indices = @transform_4, window_bounds = array<i64: 1, 32>}, {pipeline_mode = #tpu.pipeline_mode<synchronous>, transform_indices = @transform_5, window_bounds = array<i64: 4, 32>}, {transform_indices = @transform_6, window_bounds = array<i64: 1, 4, 32>}]} {
    %c0 = arith.constant 0 : index
    %c0_0 = arith.constant 0 : index
    %c0_1 = arith.constant 0 : index
    %0 = vector.load %arg1[%c0, %c0_0, %c0_1] : memref<1x32x32xf32, #tpu.memory_space<vmem>>, vector<1x32x32xf32>
    %1 = vector.shape_cast %0 : vector<1x32x32xf32> to vector<32x32xf32>
    %c0_2 = arith.constant 0 : index
    %c0_3 = arith.constant 0 : index
    %c0_4 = arith.constant 0 : index
    %2 = vector.load %arg2[%c0_2, %c0_3, %c0_4] : memref<1x32x32xf32, #tpu.memory_space<vmem>>, vector<1x32x32xf32>
    %3 = vector.shape_cast %2 : vector<1x32x32xf32> to vector<32x32xf32>
    %cst = arith.constant dense<0.000000e+00> : vector<32x32xf32>
    %4 = tpu.matmul %1, %3, %cst {dimension_numbers = #tpu.dot_dimension_numbers<[1], [0], [0], [1], [0, 0, 1, 1], [], []>} : vector<32x32xf32>, vector<32x32xf32>, vector<32x32xf32> -> vector<32x32xf32>
    %c0_5 = arith.constant 0 : index
    %c0_6 = arith.constant 0 : index
    %5 = vector.load %arg3[%c0_5, %c0_6] : memref<1x32xf32, #tpu.memory_space<vmem>>, vector<1x32xf32>
    %6 = vector.broadcast %5 : vector<1x32xf32> to vector<32x32xf32>
    %7 = arith.addf %4, %6 : vector<32x32xf32>
    %cst_7 = arith.constant 0.000000e+00 : f32
    %8 = vector.broadcast %cst_7 : f32 to vector<32x32xf32>
    %9 = arith.maximumf %7, %8 : vector<32x32xf32>
    %cst_8 = arith.constant dense<0.000000e+00> : vector<32x32xf32>
    %10 = tpu.matmul %1, %9, %cst_8 {dimension_numbers = #tpu.dot_dimension_numbers<[1], [0], [0], [1], [0, 0, 1, 1], [], []>} : vector<32x32xf32>, vector<32x32xf32>, vector<32x32xf32> -> vector<32x32xf32>
    %c0_9 = arith.constant 0 : index
    %c0_10 = arith.constant 0 : index
    %11 = vector.load %arg4[%c0_9, %c0_10] : memref<32x32xf32, #tpu.memory_space<vmem>>, vector<32x32xf32>
    %cst_11 = arith.constant dense<0.000000e+00> : vector<32x32xf32>
    %12 = tpu.matmul %10, %11, %cst_11 {dimension_numbers = #tpu.dot_dimension_numbers<[1], [0], [0], [1], [0, 0, 1, 1], [], []>} : vector<32x32xf32>, vector<32x32xf32>, vector<32x32xf32> -> vector<32x32xf32>
    %c0_12 = arith.constant 0 : index
    %c0_13 = arith.constant 0 : index
    %13 = vector.load %arg5[%c0_12, %c0_13] : memref<1x32xf32, #tpu.memory_space<vmem>>, vector<1x32xf32>
    %14 = vector.broadcast %13 : vector<1x32xf32> to vector<32x32xf32>
    %15 = arith.addf %12, %14 : vector<32x32xf32>
    %cst_14 = arith.constant 0.000000e+00 : f32
    %16 = vector.broadcast %cst_14 : f32 to vector<32x32xf32>
    %17 = arith.maximumf %15, %16 : vector<32x32xf32>
    %c0_15 = arith.constant 0 : index
    %c0_16 = arith.constant 0 : index
    %18 = vector.load %arg6[%c0_15, %c0_16] : memref<4x32xf32, #tpu.memory_space<vmem>>, vector<4x32xf32>
    %cst_17 = arith.constant dense<0.000000e+00> : vector<4x32xf32>
    %19 = tpu.matmul %18, %17, %cst_17 {dimension_numbers = #tpu.dot_dimension_numbers<[1], [0], [0], [1], [0, 0, 1, 1], [], []>} : vector<4x32xf32>, vector<32x32xf32>, vector<4x32xf32> -> vector<4x32xf32>
    %c0_18 = arith.constant 0 : index
    %c0_19 = arith.constant 0 : index
    %c0_20 = arith.constant 0 : index
    %20 = vector.load %arg7[%c0_18, %c0_19, %c0_20] : memref<1x4x32xf32, #tpu.memory_space<vmem>>, vector<1x4x32xf32>
    %21 = vector.shape_cast %20 : vector<1x4x32xf32> to vector<4x32xf32>
    %22 = vector.shape_cast %19 : vector<4x32xf32> to vector<1x4x32xf32>
    tpu.vector_store %arg7[%c0_18, %c0_19, %c0_20], %22 {strides = array<i32>} : memref<1x4x32xf32, #tpu.memory_space<vmem>>, vector<1x4x32xf32>,
    return
  }
  func.func @transform_0(%arg0: i32) -> (i32, i32, i32) {
    %c0_i32 = arith.constant 0 : i32
    %c0_i32_0 = arith.constant 0 : i32
    %c0_i32_1 = arith.constant 0 : i32
    return %arg0, %c0_i32, %c0_i32_0 : i32, i32, i32
  }
  func.func @transform_1(%arg0: i32) -> (i32, i32, i32) {
    %c0_i32 = arith.constant 0 : i32
    %c0_i32_0 = arith.constant 0 : i32
    %c0_i32_1 = arith.constant 0 : i32
    return %arg0, %c0_i32, %c0_i32_0 : i32, i32, i32
  }
  func.func @transform_2(%arg0: i32) -> (i32, i32) {
    %c0_i32 = arith.constant 0 : i32
    %c0_i32_0 = arith.constant 0 : i32
    %c0_i32_1 = arith.constant 0 : i32
    return %c0_i32, %c0_i32_0 : i32, i32
  }
  func.func @transform_3(%arg0: i32) -> (i32, i32) {
    %c0_i32 = arith.constant 0 : i32
    %c0_i32_0 = arith.constant 0 : i32
    %c0_i32_1 = arith.constant 0 : i32
    return %c0_i32, %c0_i32_0 : i32, i32
  }
  func.func @transform_4(%arg0: i32) -> (i32, i32) {
    %c0_i32 = arith.constant 0 : i32
    %c0_i32_0 = arith.constant 0 : i32
    %c0_i32_1 = arith.constant 0 : i32
    return %c0_i32, %c0_i32_0 : i32, i32
  }
  func.func @transform_5(%arg0: i32) -> (i32, i32) {
    %c0_i32 = arith.constant 0 : i32
    %c0_i32_0 = arith.constant 0 : i32
    %c0_i32_1 = arith.constant 0 : i32
    return %c0_i32, %c0_i32_0 : i32, i32
  }
  func.func @transform_6(%arg0: i32) -> (i32, i32, i32) {
    %c0_i32 = arith.constant 0 : i32
    %c0_i32_0 = arith.constant 0 : i32
    %c0_i32_1 = arith.constant 0 : i32
    return %arg0, %c0_i32, %c0_i32_0 : i32, i32, i32
  }
}

</mosaic_0001>

<bundles_post_ra>
// kernel: tpu_custom_call.1
= control target key start
LH: loop header
LB: loop body
LE: loop exit
PB: predicated region body
PF: predicated region fallthrough
CT: control target
= control target key end

     0   :  { %11 = vsyncpa [#allocation3], 0  ;;  %s831_s0 = inlined_call_operand.hbm [shape: f32[1,32,32], index: 0, kind: input, shape index: {}]   ;;  %s832_s1 = inlined_call_operand.hbm [shape: f32[1,32,32], index: 1, kind: input, shape index: {}]   ;;  %s833_s2 = inlined_call_operand.vmem [shape: f32[1,32], index: 2, kind: input, shape index: {}]   ;;  %s834_s3 = inlined_call_operand.hbm [shape: f32[32,32], index: 3, kind: input, shape index: {}]   ;;  %s835_s4 = inlined_call_operand.vmem [shape: f32[1,32], index: 4, kind: input, shape index: {}]   ;;  %s836_s5 = inlined_call_operand.vmem [shape: f32[4,32], index: 5, kind: input, shape index: {}]   ;;  %s837_s6 = inlined_call_operand.hbm [shape: f32[1,4,32], index: 6, kind: output, shape index: {}]  }
   0x1   :  { %12 = vsyncpa [#allocation6], 0 }
   0x2   :  { %13 = vsyncpa [#allocation4], 0  ;;  %s701_s21 = smov [#allocation5]   ;;  %s702_s23 = smov [#allocation2]  }
   0x3   :  { %s31_s22 = sshll.u32 %s701_s21, 4  ;;  %s19_s24 = sshll.u32 %s702_s23, 4  ;;  %s32_s22 = int_to_ptr.vmem [resolvable:$true] %s31_s22  ;;  %s745_s24 = int_to_ptr.vmem [resolvable:$true] %s19_s24 }
   0x4   :  { %s607_s27 = scalar_lea.hbm %s832_s1, 512 }
   0x5   :  { %p608_p0 = scmp.ne.s32.totalorder %s832_s1, %s607_s27  ;;  %p611_p1 = scmp.lt.u32.totalorder %s607_s27, %s832_s1 }
   0x7   :  { %p613_p2 = pnand %p611_p1, %p608_p0 }
   0x9   :  { %616 = shalt.err (!%p613_p2)
}
   0xa   :  { %s617_s8 = scalar_lea.vmem %s32_s22, 512  ;;  %p622_p4 = scmp.lt.s32.totalorder %s32_s22, %s32_s22 }
   0xb   :  { %p618_p3 = scmp.ne.s32.totalorder %s32_s22, %s617_s8  ;;  %p623_p5 = scmp.lt.s32.totalorder %s617_s8, %s617_s8 }
   0xd   :  { %p624_p6 = por %p623_p5, %p622_p4 }
   0xf   :  { %p625_p7 = pnand %p624_p6, %p618_p3 }
  0x11   :  { %628 = shalt.err (!%p625_p7)
}
  0x12   :  { %s703_s9 = smov 128   ;;  %s704_s10 = smov 8  }
  0x13   :  { %37 = dma.hbm_to_vmem [thread:$0]  %s832_s1, 512, %s32_s22, [#allocation6], %s703_s9, %s703_s9, %s704_s10  }
  0x14   :  { %s629_s15 = scalar_lea.hbm %s831_s0, 512 }
  0x15   :  { %p630_p8 = scmp.ne.s32.totalorder %s831_s0, %s629_s15  ;;  %p633_p9 = scmp.lt.u32.totalorder %s629_s15, %s831_s0 }
  0x17   :  { %p635_p10 = pnand %p633_p9, %p630_p8 }
  0x19   :  { %638 = shalt.err (!%p635_p10)
}
  0x1a   :  { %s639_s20 = scalar_lea.vmem %s745_s24, 512  ;;  %p644_p12 = scmp.lt.s32.totalorder %s745_s24, %s745_s24 }
  0x1b   :  { %p640_p11 = scmp.ne.s32.totalorder %s745_s24, %s639_s20  ;;  %p645_p13 = scmp.lt.s32.totalorder %s639_s20, %s639_s20 }
  0x1d   :  { %p646_p0 = por %p645_p13, %p644_p12 }
  0x1f   :  { %p647_p1 = pnand %p646_p0, %p640_p11 }
  0x21   :  { %650 = shalt.err (!%p647_p1)
}
  0x22   :  { %25 = dma.hbm_to_vmem [thread:$0]  %s831_s0, 512, %s745_s24, [#allocation3], %s703_s9, %s703_s9, %s704_s10  }
  0x23   :  { %s705_s22 = smov [#allocation7]   ;;  %s651_s27 = scalar_lea.hbm %s834_s3, 512 }
  0x24   :  { %s45_s23 = sshll.u32 %s705_s22, 4  ;;  %p652_p2 = scmp.ne.s32.totalorder %s834_s3, %s651_s27  ;;  %s46_s23 = int_to_ptr.vmem [resolvable:$true] %s45_s23 }
  0x25   :  { %p655_p3 = scmp.lt.u32.totalorder %s651_s27, %s834_s3 }
  0x27   :  { %p657_p4 = pnand %p655_p3, %p652_p2 }
  0x29   :  { %660 = shalt.err (!%p657_p4)
}
  0x2a   :  { %s661_s8 = scalar_lea.vmem %s46_s23, 512  ;;  %p666_p6 = scmp.lt.s32.totalorder %s46_s23, %s46_s23 }
  0x2b   :  { %p662_p5 = scmp.ne.s32.totalorder %s46_s23, %s661_s8  ;;  %p667_p7 = scmp.lt.s32.totalorder %s661_s8, %s661_s8 }
  0x2d   :  { %p668_p8 = por %p667_p7, %p666_p6 }
  0x2f   :  { %p669_p9 = pnand %p668_p8, %p662_p5 }
  0x31   :  { %672 = shalt.err (!%p669_p9)
}
  0x32   :  { %51 = dma.hbm_to_vmem [thread:$0]  %s834_s3, 512, %s46_s23, [#allocation6], %s703_s9, %s703_s9, %s704_s10  }
  0x33   :  { %695 = dma.done.wait [#allocation3], 512  }
  0x34   :  { %696 = vsyncadd [#allocation3], 4294966784 }
  0x35   :  { %697 = dma.done.wait [#allocation6], 1024  }
  0x36   :  { %698 = vsyncadd [#allocation6], 4294966272  ;;  %vm80_vm0 = vcmask 261120   ;;  %v69_v0 = vld [vmem:[#allocation5] sm:$0xff]  ;;  %v70_v1 = vld [vmem:[#allocation5 + $0x8] sm:$0xff]  ;;  %v706_v35 = vmov 0.0|0.0  }
  0x37   :  { %v71_v2 = vld [vmem:[#allocation5 + $0x10] sm:$0xff]  ;;  %v568_v3 = vpack.c.bf16 %v70_v1, %v69_v0  ;;  %v72_v4 = vld [vmem:[#allocation5 + $0x18] sm:$0xff]  ;;  %v65_v5 = vld [vmem:[#allocation2] sm:$0xff]  ;;  %vm707_vm1 = vmmov 0   ;;  %v708_v36 = vmov 0.0   ;;  %vm453_vm2 = vcmask 257024  }
  0x38   :  { %v572_v6 = vpack.c.bf16 %v72_v4, %v71_v2  ;;  %523 = vmatprep.mubr.msk.f32.mxu0 %vm80_vm0, %v65_v5  ;;  %537 = vmatprep.mubr.msk.f32.mxu1 %vm80_vm0, %v65_v5  ;;  %v66_v7 = vld [vmem:[#allocation2 + $0x8] sm:$0xff]  ;;  %v67_v8 = vld [vmem:[#allocation2 + $0x10] sm:$0xff]  ;;  %v68_v9 = vld [vmem:[#allocation2 + $0x18] sm:$0xff] }
  0x39   :  { %569 = vmatprep.subr.bf16.mxu0 %v568_v3  ;;  %v267_v10 = vld [vmem:[#allocation7] sm:$0xff]  ;;  %v268_v11 = vld [vmem:[#allocation7 + $0x8] sm:$0xff]  ;;  %v269_v12 = vld [vmem:[#allocation7 + $0x10] sm:$0xff] }
  0x3a   :  { %571 = vmatpush3.bf16.msra.mxu0 %v568_v3  ;;  %v584_v13 = vpack.c.bf16 %v268_v11, %v267_v10  ;;  %v270_v14 = vld [vmem:[#allocation7 + $0x18] sm:$0xff]  ;;  %v471_v16 = vld [vmem:[%s833_s2] ss:$0 sm:$0xff] }
  0x3b   :  { %573 = vmatprep.subr.bf16.mxu0 %v572_v6  ;;  %v588_v15 = vpack.c.bf16 %v270_v14, %v269_v12  ;;  %v480_v37 = vld [vmem:[%s835_s4] ss:$0 sm:$0xff]  ;;  %s709_s4 = smov [#allocation8]  }
  0x3c   :  { %v379_v52 = vld [vmem:[%s836_s5] sm:$0xf]  ;;  %s461_s13 = sshll.u32 %s709_s4, 4  ;;  %s462_s13 = int_to_ptr.vmem [resolvable:$true] %s461_s13 }
  0x3d   :  { %s673_s14 = scalar_lea.vmem %s462_s13, 64  ;;  %p678_p11 = scmp.lt.s32.totalorder %s462_s13, %s462_s13 }
  0x3e   :  { %575 = vmatpush3.bf16.msra.mxu0 %v572_v6  ;;  %p674_p10 = scmp.ne.s32.totalorder %s462_s13, %s673_s14  ;;  %p679_p12 = scmp.lt.s32.totalorder %s673_s14, %s673_s14 }
  0x3f   :  { %585 = vmatprep.subr.bf16.mxu0 %v584_v13 }
  0x40   :  { %p680_p13 = por %p679_p12, %p678_p11 }
  0x41   :  { %524 = vmatmul.mubr.msk.f32.vlgmr.msra.gmra.mrb[0].mxu0 %vm80_vm0, %v66_v7 }
  0x42   :  { %526 = vmatprep.mubr.msk.f32.mxu0 %vm80_vm0, %v67_v8  ;;  %587 = vmatpush3.bf16.msra.mxu0 %v584_v13  ;;  %p681_p0 = pnand %p680_p13, %p674_p10 }
  0x43   :  { %589 = vmatprep.subr.bf16.mxu0 %v588_v15 }
  0x45   :  { %527 = vmatmul.mubr.msk.f32.gmra.mrb[2].mxu0 %vm80_vm0, %v68_v9 }
  0x46   :  { %591 = vmatpush3.bf16.msra.mxu0 %v588_v15 }
 0x114   :  { %v525_v17 = vpop.f32.mrb[0].mxu0 }
 0x115   :  { %v165_v18 = vadd.f32 %v525_v17, %v471_v16  ;;  %v159_v19 = vpop.f32.mrb[1].mxu0 }
 0x116   :  { %v160_v20 = vadd.f32 %v471_v16, %v159_v19 }
 0x117   :  { %v179_v21 = vmax.f32 %v165_v18, 0.0 }
 0x118   :  { %v178_v22 = vmax.f32 %v160_v20, 0.0  ;;  %v528_v23 = vpop.f32.mrb[2].mxu0 }
 0x119   :  { %v175_v24 = vadd.f32 %v528_v23, %v471_v16  ;;  %v169_v25 = vpop.f32.mrb[3].mxu0 }
 0x11a   :  { %v170_v26 = vadd.f32 %v471_v16, %v169_v25  ;;  %v576_v27 = vpack.c.bf16 %v179_v21, %v178_v22 }
 0x11b   :  { %v181_v28 = vmax.f32 %v175_v24, 0.0 }
 0x11c   :  { %v180_v29 = vmax.f32 %v170_v26, 0.0  ;;  %577 = vmatprep.subr.bf16.mxu1 %v576_v27 }
 0x11d   :  { %579 = vmatpush3.bf16.msra.mxu1 %v576_v27 }
 0x11e   :  { %v580_v30 = vpack.c.bf16 %v181_v28, %v180_v29 }
 0x120   :  { %581 = vmatprep.subr.bf16.mxu1 %v580_v30 }
 0x121   :  { %583 = vmatpush3.bf16.msra.mxu1 %v580_v30 }
 0x122   :  { %592 = vmatprep.subr.bf16.mxu1 %v706_v35 }
 0x124   :  { %538 = vmatmul.mubr.msk.f32.vlgmr.msra.gmra.mrb[0].mxu1 %vm80_vm0, %v66_v7 }
 0x125   :  { %540 = vmatprep.mubr.msk.f32.mxu1 %vm80_vm0, %v67_v8 }
 0x128   :  { %541 = vmatmul.mubr.msk.f32.gmra.mrb[2].mxu1 %vm80_vm0, %v68_v9 }
 0x129   :  { %565 = vmatprep.mubr.msk.f32.mxu1 %vm707_vm1, %v708_v36 }
 0x1f7   :  { %v539_v31 = vpop.f32.mrb[0].mxu1 }
 0x1f8   :  { %v248_v32 = vpop.f32.mrb[1].mxu1 }
 0x1f9   :  { %551 = vmatprep.mubr.msk.f32.mxu0 %vm80_vm0, %v248_v32 }
 0x1fa   :  { %552 = vmatmul.mubr.msk.f32.vlgmr.msra.gmra.mrb[4].mxu0 %vm80_vm0, %v539_v31 }
 0x1fb   :  { %v542_v33 = vpop.f32.mrb[2].mxu1 }
 0x1fc   :  { %v258_v34 = vpop.f32.mrb[3].mxu1 }
 0x1fd   :  { %554 = vmatprep.mubr.msk.f32.mxu0 %vm80_vm0, %v258_v34 }
 0x1fe   :  { %555 = vmatmul.mubr.msk.f32.gmra.mrb[6].mxu0 %vm80_vm0, %v542_v33 }
 0x2cd   :  { %v553_v38 = vpop.f32.mrb[4].mxu0 }
 0x2ce   :  { %v362_v39 = vadd.f32 %v553_v38, %v480_v37  ;;  %v356_v40 = vpop.f32.mrb[5].mxu0 }
 0x2cf   :  { %v357_v41 = vadd.f32 %v480_v37, %v356_v40 }
 0x2d0   :  { %v376_v42 = vmax.f32 %v362_v39, 0.0 }
 0x2d1   :  { %v375_v43 = vmax.f32 %v357_v41, 0.0  ;;  %v556_v44 = vpop.f32.mrb[6].mxu0 }
 0x2d2   :  { %v372_v45 = vadd.f32 %v556_v44, %v480_v37  ;;  %v366_v46 = vpop.f32.mrb[7].mxu0 }
 0x2d3   :  { %v593_v47 = vpack.c.bf16 %v376_v42, %v375_v43  ;;  %v367_v48 = vadd.f32 %v480_v37, %v366_v46 }
 0x2d4   :  { %v378_v49 = vmax.f32 %v372_v45, 0.0 }
 0x2d5   :  { %v377_v50 = vmax.f32 %v367_v48, 0.0  ;;  %594 = vmatpush3.bf16.msra.mxu1 %v593_v47 }
 0x2d6   :  { %595 = vmatprep.subr.bf16.mxu1 %v706_v35 }
 0x2d7   :  { %v596_v51 = vpack.c.bf16 %v378_v49, %v377_v50 }
 0x2d9   :  { %597 = vmatpush3.bf16.msra.mxu1 %v596_v51 }
 0x2dc   :  { %566 = vmatmul.mubr.msk.f32.vlgmr.msra.gmra.mrb[4].mxu1 %vm80_vm0, %v379_v52 }
 0x3af   :  { %v449_v53 = vpop.f32.mrb[4].mxu1 }
 0x3b0   :  { %v567_v54 = vpop.f32.mrb[5].mxu1  ;;  %454 = vst.msk [vmem:[#allocation8] sm:$0xf] %vm453_vm2, %v449_v53 }
 0x3b1   :  { %684 = shalt.err (!%p681_p0)
}
 0x3b2   :  { %s685_s5 = scalar_lea.hbm %s837_s6, 64 }
 0x3b3   :  { %p686_p1 = scmp.ne.s32.totalorder %s837_s6, %s685_s5  ;;  %p689_p2 = scmp.lt.u32.totalorder %s685_s5, %s837_s6 }
 0x3b5   :  { %p691_p3 = pnand %p689_p2, %p686_p1 }
 0x3b7   :  { %694 = shalt.err (!%p691_p3)
}
 0x3b8   :  { %464 = dma.vmem_to_hbm [thread:$0]  %s462_s13, 64, %s837_s6, [#allocation4]  }
 0x3b9   :  { %699 = dma.done.wait [#allocation4], 64  }
 0x3ba   :  { %700 = vsyncadd [#allocation4], 4294967232 }
 0x3bb   :  { %468 = vsyncpa [#allocation3], 1 }
 0x3bc   :  { %469 = vsyncpa [#allocation6], 1 }
 0x3bd   :  { %470 = vsyncpa [#allocation4], 1 }

</bundles_post_ra>
